<compile_context>
chip_gen: v7x
topology: tpu7x:2x2x1
jax: 0.10.0
libtpu: 0.0.40
codegen_flags: <defaults>
</compile_context>

<pallas_src>
import jax
import jax.numpy as jnp
from jax.experimental import pallas as pl
from jax.experimental.pallas import tpu as pltpu

_LANE = 128
_SUBLANE = 8


def _round_up(n, m):
    return ((n + m - 1) // m) * m


def _make_mlp_kernel(depth, compute_dtype):
    """Kernel refs: (x, w_in, b_in, [w_hid, b_hid,] w_out, b_out, out)."""

    def kernel(*refs):
        x_ref, out_ref = refs[0], refs[-1]
        params = refs[1:-1]
        w_in, b_in = params[0], params[1]
        if depth > 0:
            w_hid, b_hid = params[2], params[3]
        w_out, b_out = params[-2], params[-1]

        # Cast to the MXU compute dtype in-kernel (avoids any wrapper-side padded copy of x).
        h = x_ref[...].astype(compute_dtype)

        # First Unit: Linear + tanh. MXU matmul with f32 accumulation; bias add + tanh in f32.
        a = jnp.dot(h, w_in[...], preferred_element_type=jnp.float32) + b_in[...]
        h = jnp.tanh(a).astype(compute_dtype)

        # `depth` hidden Units with stacked weights; statically unrolled.
        # NOTE: for narrow widths the f32 tanh on padded lanes can make the EUP the saturating
        # slot on v6e/v7x; if a bundle dump confirms that, swap in a VALU polynomial tanh there
        # (keep jnp.tanh on v5e: no bf16 EUP).
        for li in range(depth):
            a = jnp.dot(h, w_hid[li], preferred_element_type=jnp.float32) + b_hid[li]
            h = jnp.tanh(a).astype(compute_dtype)

        # Final nn.Linear: no activation.
        a = jnp.dot(h, w_out[...], preferred_element_type=jnp.float32) + b_out[...]
        out_ref[...] = a.astype(out_ref.dtype)

    return kernel


def nn1_forward(x, weights, biases, *, batch_tile=None, compute_dtype=jnp.bfloat16,
                out_dtype=jnp.float32):
    """NN1 forward as one fused, weight-resident Pallas TPU kernel.

    x:       (B, in_N) float32
    weights: list of (fan_in, fan_out) arrays (transposed vs torch nn.Linear)
    biases:  list of (fan_out,) or (1, fan_out) arrays
    Returns: (B, out_N) in `out_dtype` (float32 by default, matching the torch module).
    """
    B, in_N = x.shape
    num_layers = len(weights)
    assert num_layers >= 2, "NN1 = first Unit + depth hidden Units + final Linear"
    depth = num_layers - 2
    width = weights[0].shape[1]
    out_N = weights[-1].shape[1]
    cdt = jnp.dtype(compute_dtype)

    # ---- lane-dense zero-padding of hidden / output feature dims ------------------
    w_pad = _round_up(max(width, 1), _LANE)
    o_pad = _round_up(max(out_N, 1), _LANE)

    def _pad_w(w, rows, cols):
        fi, fo = w.shape
        return jnp.zeros((rows, cols), cdt).at[:fi, :fo].set(w.astype(cdt))

    def _pad_b(b, cols):
        b = jnp.asarray(b, jnp.float32).reshape(1, -1)
        return jnp.zeros((1, cols), jnp.float32).at[:, :b.shape[1]].set(b)

    w_in = _pad_w(weights[0], in_N, w_pad)          # K dim left unpadded (x is unpadded)
    b_in = _pad_b(biases[0], w_pad)
    w_out = _pad_w(weights[-1], w_pad, o_pad)
    b_out = _pad_b(biases[-1], o_pad)
    param_arrays = [w_in, b_in]
    if depth > 0:
        w_hid = jnp.stack([_pad_w(weights[1 + li], w_pad, w_pad) for li in range(depth)])
        b_hid = jnp.stack([_pad_b(biases[1 + li], w_pad) for li in range(depth)])
        param_arrays += [w_hid, b_hid]
    param_arrays += [w_out, b_out]

    # ---- batch tiling: few fat tiles (target 256 rows), minimal batch padding -----
    if batch_tile is None:
        num_tiles = max(1, pl.cdiv(B, 256))
        tb = _round_up(pl.cdiv(B, num_tiles), _SUBLANE)
    else:
        tb = max(_SUBLANE, _round_up(int(batch_tile), _SUBLANE))   # enforce sublane multiple
        num_tiles = pl.cdiv(B, tb)
    B_pad = num_tiles * tb

    xp = x if B_pad == B else jnp.zeros((B_pad, in_N), x.dtype).at[:B, :].set(x)

    # ---- VMEM budget (params single-buffered, activations double-buffered) --------
    param_bytes = sum(int(a.size) * a.dtype.itemsize for a in param_arrays)
    act_bytes = tb * in_N * xp.dtype.itemsize + tb * o_pad * jnp.dtype(out_dtype).itemsize
    live_bytes = 3 * tb * w_pad * 4                  # f32 accum + activations in flight
    needed = param_bytes + 2 * act_bytes + live_bytes + (2 << 20)

    vmem_cap = 64 * 2**20                            # conservative fallback (v7x per-TC VMEM)
    try:
        vmem_cap = int(getattr(pltpu.get_tpu_info(), "vmem_capacity_bytes", vmem_cap))
    except Exception:
        pass
    vmem_ceiling = int(0.85 * vmem_cap)              # ~54 MiB v7x, ~108 MiB v5e/v6e
    if needed > vmem_ceiling:
        # TODO(synk): layer-streaming variant (grid over layers / pltpu.emit_pipeline, one
        # double-buffered weight block at a time) for models too big to stay VMEM-resident.
        raise ValueError(
            f"NN1 params+activations (~{needed >> 20} MiB) exceed ~85% of VMEM "
            f"({vmem_ceiling >> 20} MiB); layer-streaming path not implemented.")
    vmem_limit = min(max(int(needed), 16 * 2**20), vmem_ceiling)

    # ---- cost estimate ---------------------------------------------------------------
    flops = 2 * B_pad * (in_N * w_pad + depth * w_pad * w_pad + w_pad * o_pad)
    transcendentals = B_pad * w_pad * (depth + 1)
    bytes_accessed = int(xp.size) * xp.dtype.itemsize + param_bytes \
        + B_pad * o_pad * jnp.dtype(out_dtype).itemsize
    cost = pl.CostEstimate(flops=int(flops), transcendentals=int(transcendentals),
                           bytes_accessed=int(bytes_accessed))

    kernel = _make_mlp_kernel(depth, cdt)
    x_spec = pl.BlockSpec((tb, in_N), lambda i: (i, 0))      # full (unpadded) feature dim
    out_spec = pl.BlockSpec((tb, o_pad), lambda i: (i, 0))   # lane-dense output slab

    def _call(single_buffer_params):
        in_specs = [x_spec]
        for a in param_arrays:
            idx_map = (lambda i, _nd=a.ndim: (0,) * _nd)     # constant block index
            if single_buffer_params:
                spec = pl.BlockSpec(tuple(a.shape), idx_map, pipeline_mode=pl.Buffered(1))
            else:
                spec = pl.BlockSpec(tuple(a.shape), idx_map)
            in_specs.append(spec)
        return pl.pallas_call(
            kernel,
            out_shape=jax.ShapeDtypeStruct((B_pad, o_pad), out_dtype),
            grid_spec=pltpu.PrefetchScalarGridSpec(
                num_scalar_prefetch=0,
                grid=(num_tiles,),
                in_specs=in_specs,
                out_specs=out_spec,
            ),
            compiler_params=pltpu.CompilerParams(
                dimension_semantics=("parallel",),   # batch tiles may shard across v7x's 2 TCs
                vmem_limit_bytes=int(vmem_limit),
            ),
            cost_estimate=cost,
        )(xp, *param_arrays)

    try:
        # Constant weights/biases never change across the grid: single-buffer them so only one
        # VMEM copy is allocated (halves resident weight VMEM vs default double-buffering).
        out_padded = _call(single_buffer_params=True)
    except Exception:
        # Fallback for Pallas versions that reject pl.Buffered(1) on inputs.
        out_padded = _call(single_buffer_params=False)

    return out_padded[:B, :out_N]


def init_nn1_params(key, in_N, width, depth, out_N):
    """Deterministic init matching nn.Linear's default U(-1/sqrt(fan_in), 1/sqrt(fan_in))."""
    dims = [(in_N, width)] + [(width, width)] * depth + [(width, out_N)]
    weights, biases = [], []
    for (fan_in, fan_out) in dims:
        key, kw, kb = jax.random.split(key, 3)
        bound = 1.0 / jnp.sqrt(jnp.float32(fan_in))
        w = jax.random.uniform(kw, (fan_in, fan_out), jnp.float32, -bound, bound)
        b = jax.random.uniform(kb, (1, fan_out), jnp.float32, -bound, bound)
        weights.append(w)
        biases.append(b)
    return weights, biases


def nn1_reference(x, weights, biases):
    h = x
    n = len(weights)
    for i, (w, b) in enumerate(zip(weights, biases)):
        h = h @ w + b
        if i < n - 1:
            h = jnp.tanh(h)
    return h


if __name__ == "__main__":
    # Small shapes consistent with NN1(in_N, width, depth, out_N)
    in_N, width, depth, out_N = 4, 32, 3, 2
    B = 8

    key = jax.random.PRNGKey(0)
    key, kx = jax.random.split(key)
    x = jax.random.normal(kx, (B, in_N), jnp.float32)

    weights, biases = init_nn1_params(key, in_N, width, depth, out_N)
    ref = nn1_reference(x, weights, biases)

    # f32 compute path: exact match against reference.
    out_f32 = jax.block_until_ready(
        nn1_forward(x, weights, biases, compute_dtype=jnp.float32))
    assert out_f32.shape == (B, out_N)
    assert jnp.allclose(out_f32, ref, atol=1e-5, rtol=1e-5), (out_f32, ref)

    # Default bf16-MXU / f32-accumulate path: loose tolerance vs f32 reference.
    out_bf16 = jax.block_until_ready(nn1_forward(x, weights, biases))
    assert out_bf16.shape == (B, out_N)
    assert jnp.allclose(out_bf16, ref, atol=5e-2, rtol=5e-2), (out_bf16, ref)

    # Multi-tile grid path (B=300 -> 2 batch tiles of 152 rows, 4 padded rows), f32 exact.
    B2 = 300
    key, kx2 = jax.random.split(key)
    x2 = jax.random.normal(kx2, (B2, in_N), jnp.float32)
    ref2 = nn1_reference(x2, weights, biases)
    out2 = jax.block_until_ready(
        nn1_forward(x2, weights, biases, compute_dtype=jnp.float32))
    assert out2.shape == (B2, out_N)
    assert jnp.allclose(out2, ref2, atol=1e-5, rtol=1e-5), (out2, ref2)

    print("KERNEL_OK")
</pallas_src>

<mosaic_0001>
module attributes {stable_mosaic.version = 11 : i64} {
  func.func @kernel(%arg0: i32, %arg1: memref<8x4xf32, #tpu.memory_space<vmem>>, %arg2: memref<4x128xf32, #tpu.memory_space<vmem>>, %arg3: memref<1x128xf32, #tpu.memory_space<vmem>>, %arg4: memref<3x128x128xf32, #tpu.memory_space<vmem>>, %arg5: memref<3x1x128xf32, #tpu.memory_space<vmem>>, %arg6: memref<128x128xf32, #tpu.memory_space<vmem>>, %arg7: memref<1x128xf32, #tpu.memory_space<vmem>>, %arg8: memref<8x128xf32, #tpu.memory_space<vmem>>) attributes {dimension_semantics = [#tpu.dimension_semantics<parallel>], iteration_bounds = array<i64: 1>, scalar_prefetch = 0 : i64, scratch_operands = 0 : i64, tpu.core_type = #tpu.core_type<tc>, window_params = [{transform_indices = @transform_0, window_bounds = array<i64: 8, 4>}, {pipeline_mode = #tpu.pipeline_mode<synchronous>, transform_indices = @transform_1, window_bounds = array<i64: 4, 128>}, {pipeline_mode = #tpu.pipeline_mode<synchronous>, transform_indices = @transform_2, window_bounds = array<i64: 1, 128>}, {pipeline_mode = #tpu.pipeline_mode<synchronous>, transform_indices = @transform_3, window_bounds = array<i64: 3, 128, 128>}, {pipeline_mode = #tpu.pipeline_mode<synchronous>, transform_indices = @transform_4, window_bounds = array<i64: 3, 1, 128>}, {pipeline_mode = #tpu.pipeline_mode<synchronous>, transform_indices = @transform_5, window_bounds = array<i64: 128, 128>}, {pipeline_mode = #tpu.pipeline_mode<synchronous>, transform_indices = @transform_6, window_bounds = array<i64: 1, 128>}, {transform_indices = @transform_7, window_bounds = array<i64: 8, 128>}]} {
    %c0 = arith.constant 0 : index
    %c0_0 = arith.constant 0 : index
    %0 = vector.load %arg1[%c0, %c0_0] : memref<8x4xf32, #tpu.memory_space<vmem>>, vector<8x4xf32>
    %c0_1 = arith.constant 0 : index
    %c0_2 = arith.constant 0 : index
    %1 = vector.load %arg2[%c0_1, %c0_2] : memref<4x128xf32, #tpu.memory_space<vmem>>, vector<4x128xf32>
    %cst = arith.constant dense<0.000000e+00> : vector<8x128xf32>
    %2 = tpu.matmul %0, %1, %cst {dimension_numbers = #tpu.dot_dimension_numbers<[1], [0], [0], [1], [0, 0, 1, 1], [], []>} : vector<8x4xf32>, vector<4x128xf32>, vector<8x128xf32> -> vector<8x128xf32>
    %c0_3 = arith.constant 0 : index
    %c0_4 = arith.constant 0 : index
    %3 = vector.load %arg3[%c0_3, %c0_4] : memref<1x128xf32, #tpu.memory_space<vmem>>, vector<1x128xf32>
    %4 = vector.broadcast %3 : vector<1x128xf32> to vector<8x128xf32>
    %5 = arith.addf %2, %4 : vector<8x128xf32>
    %6 = math.tanh %5 : vector<8x128xf32>
    %c0_5 = arith.constant 0 : index
    %c0_6 = arith.constant 0 : index
    %c0_7 = arith.constant 0 : index
    %7 = vector.load %arg4[%c0_5, %c0_6, %c0_7] : memref<3x128x128xf32, #tpu.memory_space<vmem>>, vector<1x128x128xf32>
    %8 = vector.shape_cast %7 : vector<1x128x128xf32> to vector<128x128xf32>
    %cst_8 = arith.constant dense<0.000000e+00> : vector<8x128xf32>
    %9 = tpu.matmul %6, %8, %cst_8 {dimension_numbers = #tpu.dot_dimension_numbers<[1], [0], [0], [1], [0, 0, 1, 1], [], []>} : vector<8x128xf32>, vector<128x128xf32>, vector<8x128xf32> -> vector<8x128xf32>
    %c0_9 = arith.constant 0 : index
    %c0_10 = arith.constant 0 : index
    %c0_11 = arith.constant 0 : index
    %10 = vector.load %arg5[%c0_9, %c0_10, %c0_11] : memref<3x1x128xf32, #tpu.memory_space<vmem>>, vector<1x1x128xf32>
    %11 = vector.shape_cast %10 : vector<1x1x128xf32> to vector<1x128xf32>
    %12 = vector.broadcast %11 : vector<1x128xf32> to vector<8x128xf32>
    %13 = arith.addf %9, %12 : vector<8x128xf32>
    %14 = math.tanh %13 : vector<8x128xf32>
    %c1 = arith.constant 1 : index
    %c0_12 = arith.constant 0 : index
    %c0_13 = arith.constant 0 : index
    %15 = vector.load %arg4[%c1, %c0_12, %c0_13] : memref<3x128x128xf32, #tpu.memory_space<vmem>>, vector<1x128x128xf32>
    %16 = vector.shape_cast %15 : vector<1x128x128xf32> to vector<128x128xf32>
    %cst_14 = arith.constant dense<0.000000e+00> : vector<8x128xf32>
    %17 = tpu.matmul %14, %16, %cst_14 {dimension_numbers = #tpu.dot_dimension_numbers<[1], [0], [0], [1], [0, 0, 1, 1], [], []>} : vector<8x128xf32>, vector<128x128xf32>, vector<8x128xf32> -> vector<8x128xf32>
    %c1_15 = arith.constant 1 : index
    %c0_16 = arith.constant 0 : index
    %c0_17 = arith.constant 0 : index
    %18 = vector.load %arg5[%c1_15, %c0_16, %c0_17] : memref<3x1x128xf32, #tpu.memory_space<vmem>>, vector<1x1x128xf32>
    %19 = vector.shape_cast %18 : vector<1x1x128xf32> to vector<1x128xf32>
    %20 = vector.broadcast %19 : vector<1x128xf32> to vector<8x128xf32>
    %21 = arith.addf %17, %20 : vector<8x128xf32>
    %22 = math.tanh %21 : vector<8x128xf32>
    %c2 = arith.constant 2 : index
    %c0_18 = arith.constant 0 : index
    %c0_19 = arith.constant 0 : index
    %23 = vector.load %arg4[%c2, %c0_18, %c0_19] : memref<3x128x128xf32, #tpu.memory_space<vmem>>, vector<1x128x128xf32>
    %24 = vector.shape_cast %23 : vector<1x128x128xf32> to vector<128x128xf32>
    %cst_20 = arith.constant dense<0.000000e+00> : vector<8x128xf32>
    %25 = tpu.matmul %22, %24, %cst_20 {dimension_numbers = #tpu.dot_dimension_numbers<[1], [0], [0], [1], [0, 0, 1, 1], [], []>} : vector<8x128xf32>, vector<128x128xf32>, vector<8x128xf32> -> vector<8x128xf32>
    %c2_21 = arith.constant 2 : index
    %c0_22 = arith.constant 0 : index
    %c0_23 = arith.constant 0 : index
    %26 = vector.load %arg5[%c2_21, %c0_22, %c0_23] : memref<3x1x128xf32, #tpu.memory_space<vmem>>, vector<1x1x128xf32>
    %27 = vector.shape_cast %26 : vector<1x1x128xf32> to vector<1x128xf32>
    %28 = vector.broadcast %27 : vector<1x128xf32> to vector<8x128xf32>
    %29 = arith.addf %25, %28 : vector<8x128xf32>
    %30 = math.tanh %29 : vector<8x128xf32>
    %c0_24 = arith.constant 0 : index
    %c0_25 = arith.constant 0 : index
    %31 = vector.load %arg6[%c0_24, %c0_25] : memref<128x128xf32, #tpu.memory_space<vmem>>, vector<128x128xf32>
    %cst_26 = arith.constant dense<0.000000e+00> : vector<8x128xf32>
    %32 = tpu.matmul %30, %31, %cst_26 {dimension_numbers = #tpu.dot_dimension_numbers<[1], [0], [0], [1], [0, 0, 1, 1], [], []>} : vector<8x128xf32>, vector<128x128xf32>, vector<8x128xf32> -> vector<8x128xf32>
    %c0_27 = arith.constant 0 : index
    %c0_28 = arith.constant 0 : index
    %33 = vector.load %arg7[%c0_27, %c0_28] : memref<1x128xf32, #tpu.memory_space<vmem>>, vector<1x128xf32>
    %34 = vector.broadcast %33 : vector<1x128xf32> to vector<8x128xf32>
    %35 = arith.addf %32, %34 : vector<8x128xf32>
    %c0_29 = arith.constant 0 : index
    %c0_30 = arith.constant 0 : index
    %36 = vector.load %arg8[%c0_29, %c0_30] : memref<8x128xf32, #tpu.memory_space<vmem>>, vector<8x128xf32>
    tpu.vector_store %arg8[%c0_29, %c0_30], %35 {strides = array<i32>} : memref<8x128xf32, #tpu.memory_space<vmem>>, vector<8x128xf32>,
    return
  }
  func.func @transform_0(%arg0: i32) -> (i32, i32) {
    %c0_i32 = arith.constant 0 : i32
    %c0_i32_0 = arith.constant 0 : i32
    return %arg0, %c0_i32 : i32, i32
  }
  func.func @transform_1(%arg0: i32) -> (i32, i32) {
    %c0_i32 = arith.constant 0 : i32
    %c0_i32_0 = arith.constant 0 : i32
    %c0_i32_1 = arith.constant 0 : i32
    return %c0_i32, %c0_i32_0 : i32, i32
  }
  func.func @transform_2(%arg0: i32) -> (i32, i32) {
    %c0_i32 = arith.constant 0 : i32
    %c0_i32_0 = arith.constant 0 : i32
    %c0_i32_1 = arith.constant 0 : i32
    return %c0_i32, %c0_i32_0 : i32, i32
  }
  func.func @transform_3(%arg0: i32) -> (i32, i32, i32) {
    %c0_i32 = arith.constant 0 : i32
    %c0_i32_0 = arith.constant 0 : i32
    %c0_i32_1 = arith.constant 0 : i32
    %c0_i32_2 = arith.constant 0 : i32
    return %c0_i32, %c0_i32_0, %c0_i32_1 : i32, i32, i32
  }
  func.func @transform_4(%arg0: i32) -> (i32, i32, i32) {
    %c0_i32 = arith.constant 0 : i32
    %c0_i32_0 = arith.constant 0 : i32
    %c0_i32_1 = arith.constant 0 : i32
    %c0_i32_2 = arith.constant 0 : i32
    return %c0_i32, %c0_i32_0, %c0_i32_1 : i32, i32, i32
  }
  func.func @transform_5(%arg0: i32) -> (i32, i32) {
    %c0_i32 = arith.constant 0 : i32
    %c0_i32_0 = arith.constant 0 : i32
    %c0_i32_1 = arith.constant 0 : i32
    return %c0_i32, %c0_i32_0 : i32, i32
  }
  func.func @transform_6(%arg0: i32) -> (i32, i32) {
    %c0_i32 = arith.constant 0 : i32
    %c0_i32_0 = arith.constant 0 : i32
    %c0_i32_1 = arith.constant 0 : i32
    return %c0_i32, %c0_i32_0 : i32, i32
  }
  func.func @transform_7(%arg0: i32) -> (i32, i32) {
    %c0_i32 = arith.constant 0 : i32
    %c0_i32_0 = arith.constant 0 : i32
    return %arg0, %c0_i32 : i32, i32
  }
}

module attributes {stable_mosaic.version = 11 : i64} {
  func.func @kernel(%arg0: i32, %arg1: memref<8x4xf32, #tpu.memory_space<vmem>>, %arg2: memref<4x128xf32, #tpu.memory_space<vmem>>, %arg3: memref<1x128xf32, #tpu.memory_space<vmem>>, %arg4: memref<3x128x128xf32, #tpu.memory_space<vmem>>, %arg5: memref<3x1x128xf32, #tpu.memory_space<vmem>>, %arg6: memref<128x128xf32, #tpu.memory_space<vmem>>, %arg7: memref<1x128xf32, #tpu.memory_space<vmem>>, %arg8: memref<8x128xf32, #tpu.memory_space<vmem>>) attributes {dimension_semantics = [#tpu.dimension_semantics<parallel>], iteration_bounds = array<i64: 1>, scalar_prefetch = 0 : i64, scratch_operands = 0 : i64, tpu.core_type = #tpu.core_type<tc>, window_params = [{transform_indices = @transform_0, window_bounds = array<i64: 8, 4>}, {pipeline_mode = #tpu.pipeline_mode<synchronous>, transform_indices = @transform_1, window_bounds = array<i64: 4, 128>}, {pipeline_mode = #tpu.pipeline_mode<synchronous>, transform_indices = @transform_2, window_bounds = array<i64: 1, 128>}, {pipeline_mode = #tpu.pipeline_mode<synchronous>, transform_indices = @transform_3, window_bounds = array<i64: 3, 128, 128>}, {pipeline_mode = #tpu.pipeline_mode<synchronous>, transform_indices = @transform_4, window_bounds = array<i64: 3, 1, 128>}, {pipeline_mode = #tpu.pipeline_mode<synchronous>, transform_indices = @transform_5, window_bounds = array<i64: 128, 128>}, {pipeline_mode = #tpu.pipeline_mode<synchronous>, transform_indices = @transform_6, window_bounds = array<i64: 1, 128>}, {transform_indices = @transform_7, window_bounds = array<i64: 8, 128>}]} {
    %c0 = arith.constant 0 : index
    %c0_0 = arith.constant 0 : index
    %0 = vector.load %arg1[%c0, %c0_0] : memref<8x4xf32, #tpu.memory_space<vmem>>, vector<8x4xf32>
    %c0_1 = arith.constant 0 : index
    %c0_2 = arith.constant 0 : index
    %1 = vector.load %arg2[%c0_1, %c0_2] : memref<4x128xf32, #tpu.memory_space<vmem>>, vector<4x128xf32>
    %cst = arith.constant dense<0.000000e+00> : vector<8x128xf32>
    %2 = tpu.matmul %0, %1, %cst {dimension_numbers = #tpu.dot_dimension_numbers<[1], [0], [0], [1], [0, 0, 1, 1], [], []>} : vector<8x4xf32>, vector<4x128xf32>, vector<8x128xf32> -> vector<8x128xf32>
    %c0_3 = arith.constant 0 : index
    %c0_4 = arith.constant 0 : index
    %3 = vector.load %arg3[%c0_3, %c0_4] : memref<1x128xf32, #tpu.memory_space<vmem>>, vector<1x128xf32>
    %4 = vector.broadcast %3 : vector<1x128xf32> to vector<8x128xf32>
    %5 = arith.addf %2, %4 : vector<8x128xf32>
    %6 = math.tanh %5 : vector<8x128xf32>
    %c0_5 = arith.constant 0 : index
    %c0_6 = arith.constant 0 : index
    %c0_7 = arith.constant 0 : index
    %7 = vector.load %arg4[%c0_5, %c0_6, %c0_7] : memref<3x128x128xf32, #tpu.memory_space<vmem>>, vector<1x128x128xf32>
    %8 = vector.shape_cast %7 : vector<1x128x128xf32> to vector<128x128xf32>
    %cst_8 = arith.constant dense<0.000000e+00> : vector<8x128xf32>
    %9 = tpu.matmul %6, %8, %cst_8 {dimension_numbers = #tpu.dot_dimension_numbers<[1], [0], [0], [1], [0, 0, 1, 1], [], []>} : vector<8x128xf32>, vector<128x128xf32>, vector<8x128xf32> -> vector<8x128xf32>
    %c0_9 = arith.constant 0 : index
    %c0_10 = arith.constant 0 : index
    %c0_11 = arith.constant 0 : index
    %10 = vector.load %arg5[%c0_9, %c0_10, %c0_11] : memref<3x1x128xf32, #tpu.memory_space<vmem>>, vector<1x1x128xf32>
    %11 = vector.shape_cast %10 : vector<1x1x128xf32> to vector<1x128xf32>
    %12 = vector.broadcast %11 : vector<1x128xf32> to vector<8x128xf32>
    %13 = arith.addf %9, %12 : vector<8x128xf32>
    %14 = math.tanh %13 : vector<8x128xf32>
    %c1 = arith.constant 1 : index
    %c0_12 = arith.constant 0 : index
    %c0_13 = arith.constant 0 : index
    %15 = vector.load %arg4[%c1, %c0_12, %c0_13] : memref<3x128x128xf32, #tpu.memory_space<vmem>>, vector<1x128x128xf32>
    %16 = vector.shape_cast %15 : vector<1x128x128xf32> to vector<128x128xf32>
    %cst_14 = arith.constant dense<0.000000e+00> : vector<8x128xf32>
    %17 = tpu.matmul %14, %16, %cst_14 {dimension_numbers = #tpu.dot_dimension_numbers<[1], [0], [0], [1], [0, 0, 1, 1], [], []>} : vector<8x128xf32>, vector<128x128xf32>, vector<8x128xf32> -> vector<8x128xf32>
    %c1_15 = arith.constant 1 : index
    %c0_16 = arith.constant 0 : index
    %c0_17 = arith.constant 0 : index
    %18 = vector.load %arg5[%c1_15, %c0_16, %c0_17] : memref<3x1x128xf32, #tpu.memory_space<vmem>>, vector<1x1x128xf32>
    %19 = vector.shape_cast %18 : vector<1x1x128xf32> to vector<1x128xf32>
    %20 = vector.broadcast %19 : vector<1x128xf32> to vector<8x128xf32>
    %21 = arith.addf %17, %20 : vector<8x128xf32>
    %22 = math.tanh %21 : vector<8x128xf32>
    %c2 = arith.constant 2 : index
    %c0_18 = arith.constant 0 : index
    %c0_19 = arith.constant 0 : index
    %23 = vector.load %arg4[%c2, %c0_18, %c0_19] : memref<3x128x128xf32, #tpu.memory_space<vmem>>, vector<1x128x128xf32>
    %24 = vector.shape_cast %23 : vector<1x128x128xf32> to vector<128x128xf32>
    %cst_20 = arith.constant dense<0.000000e+00> : vector<8x128xf32>
    %25 = tpu.matmul %22, %24, %cst_20 {dimension_numbers = #tpu.dot_dimension_numbers<[1], [0], [0], [1], [0, 0, 1, 1], [], []>} : vector<8x128xf32>, vector<128x128xf32>, vector<8x128xf32> -> vector<8x128xf32>
    %c2_21 = arith.constant 2 : index
    %c0_22 = arith.constant 0 : index
    %c0_23 = arith.constant 0 : index
    %26 = vector.load %arg5[%c2_21, %c0_22, %c0_23] : memref<3x1x128xf32, #tpu.memory_space<vmem>>, vector<1x1x128xf32>
    %27 = vector.shape_cast %26 : vector<1x1x128xf32> to vector<1x128xf32>
    %28 = vector.broadcast %27 : vector<1x128xf32> to vector<8x128xf32>
    %29 = arith.addf %25, %28 : vector<8x128xf32>
    %30 = math.tanh %29 : vector<8x128xf32>
    %c0_24 = arith.constant 0 : index
    %c0_25 = arith.constant 0 : index
    %31 = vector.load %arg6[%c0_24, %c0_25] : memref<128x128xf32, #tpu.memory_space<vmem>>, vector<128x128xf32>
    %cst_26 = arith.constant dense<0.000000e+00> : vector<8x128xf32>
    %32 = tpu.matmul %30, %31, %cst_26 {dimension_numbers = #tpu.dot_dimension_numbers<[1], [0], [0], [1], [0, 0, 1, 1], [], []>} : vector<8x128xf32>, vector<128x128xf32>, vector<8x128xf32> -> vector<8x128xf32>
    %c0_27 = arith.constant 0 : index
    %c0_28 = arith.constant 0 : index
    %33 = vector.load %arg7[%c0_27, %c0_28] : memref<1x128xf32, #tpu.memory_space<vmem>>, vector<1x128xf32>
    %34 = vector.broadcast %33 : vector<1x128xf32> to vector<8x128xf32>
    %35 = arith.addf %32, %34 : vector<8x128xf32>
    %c0_29 = arith.constant 0 : index
    %c0_30 = arith.constant 0 : index
    %36 = vector.load %arg8[%c0_29, %c0_30] : memref<8x128xf32, #tpu.memory_space<vmem>>, vector<8x128xf32>
    tpu.vector_store %arg8[%c0_29, %c0_30], %35 {strides = array<i32>} : memref<8x128xf32, #tpu.memory_space<vmem>>, vector<8x128xf32>,
    return
  }
  func.func @transform_0(%arg0: i32) -> (i32, i32) {
    %c0_i32 = arith.constant 0 : i32
    %c0_i32_0 = arith.constant 0 : i32
    return %arg0, %c0_i32 : i32, i32
  }
  func.func @transform_1(%arg0: i32) -> (i32, i32) {
    %c0_i32 = arith.constant 0 : i32
    %c0_i32_0 = arith.constant 0 : i32
    %c0_i32_1 = arith.constant 0 : i32
    return %c0_i32, %c0_i32_0 : i32, i32
  }
  func.func @transform_2(%arg0: i32) -> (i32, i32) {
    %c0_i32 = arith.constant 0 : i32
    %c0_i32_0 = arith.constant 0 : i32
    %c0_i32_1 = arith.constant 0 : i32
    return %c0_i32, %c0_i32_0 : i32, i32
  }
  func.func @transform_3(%arg0: i32) -> (i32, i32, i32) {
    %c0_i32 = arith.constant 0 : i32
    %c0_i32_0 = arith.constant 0 : i32
    %c0_i32_1 = arith.constant 0 : i32
    %c0_i32_2 = arith.constant 0 : i32
    return %c0_i32, %c0_i32_0, %c0_i32_1 : i32, i32, i32
  }
  func.func @transform_4(%arg0: i32) -> (i32, i32, i32) {
    %c0_i32 = arith.constant 0 : i32
    %c0_i32_0 = arith.constant 0 : i32
    %c0_i32_1 = arith.constant 0 : i32
    %c0_i32_2 = arith.constant 0 : i32
    return %c0_i32, %c0_i32_0, %c0_i32_1 : i32, i32, i32
  }
  func.func @transform_5(%arg0: i32) -> (i32, i32) {
    %c0_i32 = arith.constant 0 : i32
    %c0_i32_0 = arith.constant 0 : i32
    %c0_i32_1 = arith.constant 0 : i32
    return %c0_i32, %c0_i32_0 : i32, i32
  }
  func.func @transform_6(%arg0: i32) -> (i32, i32) {
    %c0_i32 = arith.constant 0 : i32
    %c0_i32_0 = arith.constant 0 : i32
    %c0_i32_1 = arith.constant 0 : i32
    return %c0_i32, %c0_i32_0 : i32, i32
  }
  func.func @transform_7(%arg0: i32) -> (i32, i32) {
    %c0_i32 = arith.constant 0 : i32
    %c0_i32_0 = arith.constant 0 : i32
    return %arg0, %c0_i32 : i32, i32
  }
}

</mosaic_0001>

<bundles_post_ra>
// kernel: tpu_custom_call.1
= control target key start
LH: loop header
LB: loop body
LE: loop exit
PB: predicated region body
PF: predicated region fallthrough
CT: control target
= control target key end

     0   :  { %12 = vsyncpa [#allocation3], 0  ;;  %s1095_s0 = inlined_call_operand.vmem [shape: f32[8,4], index: 0, kind: input, shape index: {}]   ;;  %s1096_s1 = inlined_call_operand.vmem [shape: f32[4,128], index: 1, kind: input, shape index: {}]   ;;  %s1097_s2 = inlined_call_operand.vmem [shape: f32[1,128], index: 2, kind: input, shape index: {}]   ;;  %s1098_s3 = inlined_call_operand.hbm [shape: f32[3,128,128], index: 3, kind: input, shape index: {}]   ;;  %s1099_s4 = inlined_call_operand.vmem [shape: f32[3,1,128], index: 4, kind: input, shape index: {}]   ;;  %s1100_s5 = inlined_call_operand.hbm [shape: f32[128,128], index: 5, kind: input, shape index: {}]   ;;  %s1101_s6 = inlined_call_operand.vmem [shape: f32[1,128], index: 6, kind: input, shape index: {}]   ;;  %s1102_s7 = inlined_call_operand.hbm [shape: f32[8,128], index: 7, kind: output, shape index: {}]  }
   0x1   :  { %13 = vsyncpa [#allocation6], 0 }
   0x2   :  { %14 = vsyncpa [#allocation4], 0  ;;  %s947_s24 = smov [#allocation2]   ;;  %s875_s28 = scalar_lea.hbm %s1098_s3, 6144 }
   0x3   :  { %s26_s25 = sshll.u32 %s947_s24, 4  ;;  %p876_p0 = scmp.ne.s32.totalorder %s1098_s3, %s875_s28  ;;  %s27_s25 = int_to_ptr.vmem [resolvable:$true] %s26_s25 }
   0x4   :  { %p879_p1 = scmp.lt.u32.totalorder %s875_s28, %s1098_s3 }
   0x6   :  { %p881_p2 = pnand %p879_p1, %p876_p0 }
   0x8   :  { %884 = shalt.err (!%p881_p2)
}
   0x9   :  { %s885_s10 = scalar_lea.vmem %s27_s25, 6144  ;;  %p890_p4 = scmp.lt.s32.totalorder %s27_s25, %s27_s25 }
   0xa   :  { %p886_p3 = scmp.ne.s32.totalorder %s27_s25, %s885_s10  ;;  %p891_p5 = scmp.lt.s32.totalorder %s885_s10, %s885_s10 }
   0xc   :  { %p892_p6 = por %p891_p5, %p890_p4 }
   0xe   :  { %p893_p7 = pnand %p892_p6, %p886_p3 }
  0x10   :  { %896 = shalt.err (!%p893_p7)
}
  0x11   :  { %s948_s11 = smov 128   ;;  %s949_s12 = smov 8  }
  0x12   :  { %32 = dma.hbm_to_vmem [thread:$0]  %s1098_s3, 6144, %s27_s25, [#allocation3], %s948_s11, %s948_s11, %s949_s12  }
  0x13   :  { %s950_s15 = smov [#allocation5]   ;;  %s897_s19 = scalar_lea.hbm %s1100_s5, 2048 }
  0x14   :  { %s40_s16 = sshll.u32 %s950_s15, 4  ;;  %p898_p8 = scmp.ne.s32.totalorder %s1100_s5, %s897_s19  ;;  %s41_s16 = int_to_ptr.vmem [resolvable:$true] %s40_s16 }
  0x15   :  { %p901_p9 = scmp.lt.u32.totalorder %s897_s19, %s1100_s5 }
  0x17   :  { %p903_p10 = pnand %p901_p9, %p898_p8 }
  0x19   :  { %906 = shalt.err (!%p903_p10)
}
  0x1a   :  { %s907_s24 = scalar_lea.vmem %s41_s16, 2048  ;;  %p912_p12 = scmp.lt.s32.totalorder %s41_s16, %s41_s16 }
  0x1b   :  { %p908_p11 = scmp.ne.s32.totalorder %s41_s16, %s907_s24  ;;  %p913_p13 = scmp.lt.s32.totalorder %s907_s24, %s907_s24 }
  0x1d   :  { %p914_p0 = por %p913_p13, %p912_p12 }
  0x1f   :  { %p915_p1 = pnand %p914_p0, %p908_p11 }
  0x21   :  { %918 = shalt.err (!%p915_p1)
}
  0x22   :  { %46 = dma.hbm_to_vmem [thread:$0]  %s1100_s5, 2048, %s41_s16, [#allocation6], %s948_s11, %s948_s11, %s949_s12  }
  0x23   :  { %941 = dma.done.wait [#allocation3], 6144  }
  0x24   :  { %942 = vsyncadd [#allocation3], 4294961152 }
  0x25   :  { %943 = dma.done.wait [#allocation6], 2048  }
  0x26   :  { %944 = vsyncadd [#allocation6], 4294965248  ;;  %v951_v0 = vmov 0.0   ;;  %vm952_vm0 = vmmov 0   ;;  %v953_v1 = vmov 0.0|0.0   ;;  %vm68_vm1 = vcmask 1043456  }
  0x27   :  { %618 = vmatprep.subr.mxu0 %v951_v0  ;;  %620 = vmatprep.mubr.msk.f32.mxu0 %vm952_vm0, %v951_v0  ;;  %vm64_vm2 = vcmask 31744   ;;  %v56_v2 = vld [vmem:[%s1096_s1] sm:$0xf]  ;;  %v144_v5 = vld [vmem:[#allocation2 + $0x8] sm:$0xff]  ;;  %v145_v6 = vld [vmem:[#allocation2 + $0x10] sm:$0xff]  ;;  %s954_s13 = smov [#allocation7]  }
  0x28   :  { %763 = vmatprep.subr.bf16.mxu1 %v953_v1  ;;  %655 = vmatprep.mubr.msk.f32.mxu1 %vm952_vm0, %v951_v0  ;;  %v55_v3 = vld [vmem:[%s1095_s0] sm:$0xff]  ;;  %v146_v7 = vld [vmem:[#allocation2 + $0x18] sm:$0xff]  ;;  %v148_v11 = vld [vmem:[#allocation2 + $0x28] sm:$0xff]  ;;  %s529_s14 = sshll.u32 %s954_s13, 4  ;;  %s530_s14 = int_to_ptr.vmem [resolvable:$true] %s529_s14 }
  0x29   :  { %v143_v4 = vld [vmem:[#allocation2] sm:$0xff]  ;;  %619 = vmatpush3.msk.msra.mxu0 %vm68_vm1, %v56_v2  ;;  %v767_v9 = vpack.c.bf16 %v146_v7, %v145_v6  ;;  %v149_v13 = vld [vmem:[#allocation2 + $0x30] sm:$0xff]  ;;  %v150_v14 = vld [vmem:[#allocation2 + $0x38] sm:$0xff]  ;;  %s919_s15 = scalar_lea.vmem %s530_s14, 128  ;;  %p924_p3 = scmp.lt.s32.totalorder %s530_s14, %s530_s14 }
  0x2a   :  { %621 = vmatmul.mubr.msk.f32.vlgmr.msra.gmra.mrb[0].mxu0 %vm64_vm2, %v55_v3  ;;  %v764_v8 = vpack.c.bf16 %v144_v5, %v143_v4  ;;  %787 = vmatprep.subr.bf16.mxu0 %v953_v1  ;;  %v147_v10 = vld [vmem:[#allocation2 + $0x20] sm:$0xff]  ;;  %v773_v15 = vpack.c.bf16 %v150_v14, %v149_v13  ;;  %v152_v17 = vld [vmem:[#allocation2 + $0x48] sm:$0xff]  ;;  %v153_v19 = vld [vmem:[#allocation2 + $0x50] sm:$0xff]  ;;  %p920_p2 = scmp.ne.s32.totalorder %s530_s14, %s919_s15  ;;  %p925_p4 = scmp.lt.s32.totalorder %s919_s15, %s919_s15 }
  0x2b   :  { %690 = vmatprep.mubr.msk.f32.mxu0 %vm952_vm0, %v951_v0  ;;  %v770_v12 = vpack.c.bf16 %v148_v11, %v147_v10  ;;  %v151_v16 = vld [vmem:[#allocation2 + $0x40] sm:$0xff]  ;;  %v154_v20 = vld [vmem:[#allocation2 + $0x58] sm:$0xff]  ;;  %v156_v23 = vld [vmem:[#allocation2 + $0x68] sm:$0xff] }
  0x2c   :  { %765 = vmatpush3.bf16.msra.mxu1 %v764_v8  ;;  %v776_v18 = vpack.c.bf16 %v152_v17, %v151_v16  ;;  %v779_v21 = vpack.c.bf16 %v154_v20, %v153_v19  ;;  %v155_v22 = vld [vmem:[#allocation2 + $0x60] sm:$0xff]  ;;  %v157_v25 = vld [vmem:[#allocation2 + $0x70] sm:$0xff]  ;;  %v158_v26 = vld [vmem:[#allocation2 + $0x78] sm:$0xff]  ;;  %p926_p5 = por %p925_p4, %p924_p3 }
  0x2d   :  { %766 = vmatprep.subr.bf16.mxu1 %v953_v1  ;;  %v782_v24 = vpack.c.bf16 %v156_v23, %v155_v22  ;;  %v785_v27 = vpack.c.bf16 %v158_v26, %v157_v25  ;;  %v238_v28 = vld [vmem:[#allocation2 + $0x80] sm:$0xff]  ;;  %v239_v29 = vld [vmem:[#allocation2 + $0x88] sm:$0xff]  ;;  %v240_v30 = vld [vmem:[#allocation2 + $0x90] sm:$0xff] }
  0x2e   :  { %v788_v31 = vpack.c.bf16 %v239_v29, %v238_v28  ;;  %v241_v32 = vld [vmem:[#allocation2 + $0x98] sm:$0xff]  ;;  %v242_v34 = vld [vmem:[#allocation2 + $0xa0] sm:$0xff]  ;;  %v243_v35 = vld [vmem:[#allocation2 + $0xa8] sm:$0xff]  ;;  %p927_p6 = pnand %p926_p5, %p920_p2 }
  0x2f   :  { %v791_v33 = vpack.c.bf16 %v241_v32, %v240_v30  ;;  %v794_v36 = vpack.c.bf16 %v243_v35, %v242_v34  ;;  %v244_v37 = vld [vmem:[#allocation2 + $0xb0] sm:$0xff]  ;;  %v245_v38 = vld [vmem:[#allocation2 + $0xb8] sm:$0xff]  ;;  %v246_v40 = vld [vmem:[#allocation2 + $0xc0] sm:$0xff] }
  0x30   :  { %768 = vmatpush3.bf16.msra.mxu1 %v767_v9  ;;  %789 = vmatpush3.bf16.msra.mxu0 %v788_v31  ;;  %v797_v39 = vpack.c.bf16 %v245_v38, %v244_v37  ;;  %v247_v41 = vld [vmem:[#allocation2 + $0xc8] sm:$0xff]  ;;  %v539_v43 = vld [vmem:[%s1097_s2] ss:$0 sm:$0xff]  ;;  %v248_v48 = vld [vmem:[#allocation2 + $0xd0] sm:$0xff] }
  0x31   :  { %769 = vmatprep.subr.bf16.mxu1 %v953_v1  ;;  %790 = vmatprep.subr.bf16.mxu0 %v953_v1  ;;  %v800_v42 = vpack.c.bf16 %v247_v41, %v246_v40  ;;  %v249_v49 = vld [vmem:[#allocation2 + $0xd8] sm:$0xff]  ;;  %v250_v51 = vld [vmem:[#allocation2 + $0xe0] sm:$0xff]  ;;  %v251_v52 = vld [vmem:[#allocation2 + $0xe8] sm:$0xff] }
  0x32   :  { %v803_v50 = vpack.c.bf16 %v249_v49, %v248_v48  ;;  %v806_v53 = vpack.c.bf16 %v251_v52, %v250_v51  ;;  %v252_v54 = vld [vmem:[#allocation2 + $0xf0] sm:$0xff]  ;;  %v253_v55 = vld [vmem:[#allocation2 + $0xf8] sm:$0xff]  ;;  %v334_v57 = vld [vmem:[#allocation2 + $0x100] sm:$0xff] }
  0x33   :  { %v809_v56 = vpack.c.bf16 %v253_v55, %v252_v54  ;;  %v335_v58 = vld [vmem:[#allocation2 + $0x108] sm:$0xff]  ;;  %v336_v59 = vld [vmem:[#allocation2 + $0x110] sm:$0xff]  ;;  %v337_v61 = vld [vmem:[#allocation2 + $0x118] sm:$0xff] }
  0x34   :  { %771 = vmatpush3.bf16.msra.mxu1 %v770_v12  ;;  %792 = vmatpush3.bf16.msra.mxu0 %v791_v33  ;;  %v812_v60 = vpack.c.bf16 %v335_v58, %v334_v57  ;;  %v815_v62 = vpack.c.bf16 %v337_v61, %v336_v59  ;;  %v338_v63 = vld [vmem:[#allocation2 + $0x120] sm:$0xff]  ;;  %v339_v2 = vld [vmem:[#allocation2 + $0x128] sm:$0xff]  ;;  %v340_v4 = vld [vmem:[#allocation2 + $0x130] sm:$0xff] }
  0x35   :  { %772 = vmatprep.subr.bf16.mxu1 %v953_v1  ;;  %793 = vmatprep.subr.bf16.mxu0 %v953_v1  ;;  %v818_v3 = vpack.c.bf16 %v339_v2, %v338_v63  ;;  %v341_v5 = vld [vmem:[#allocation2 + $0x138] sm:$0xff]  ;;  %v342_v7 = vld [vmem:[#allocation2 + $0x140] sm:$0xff]  ;;  %v343_v8 = vld [vmem:[#allocation2 + $0x148] sm:$0xff] }
  0x36   :  { %v821_v6 = vpack.c.bf16 %v341_v5, %v340_v4  ;;  %v824_v9 = vpack.c.bf16 %v343_v8, %v342_v7  ;;  %v542_v10 = vld [vmem:[%s1099_s4] ss:$0 sm:$0xff]  ;;  %v345_v16 = vld [vmem:[#allocation2 + $0x158] sm:$0xff]  ;;  %v347_v19 = vld [vmem:[#allocation2 + $0x168] sm:$0xff] }
  0x37   :  { %v349_v22 = vld [vmem:[#allocation2 + $0x178] sm:$0xff]  ;;  %v430_v25 = vld [vmem:[#allocation5 + $0x8] sm:$0xff]  ;;  %v431_v26 = vld [vmem:[#allocation5 + $0x10] sm:$0xff] }
  0x38   :  { %774 = vmatpush3.bf16.msra.mxu1 %v773_v15  ;;  %795 = vmatpush3.bf16.msra.mxu0 %v794_v36  ;;  %v344_v15 = vld [vmem:[#allocation2 + $0x150] sm:$0xff]  ;;  %v433_v29 = vld [vmem:[#allocation5 + $0x20] sm:$0xff]  ;;  %v434_v30 = vld [vmem:[#allocation5 + $0x28] sm:$0xff] }
  0x39   :  { %775 = vmatprep.subr.bf16.mxu1 %v953_v1  ;;  %796 = vmatprep.subr.bf16.mxu0 %v953_v1  ;;  %v827_v17 = vpack.c.bf16 %v345_v16, %v344_v15  ;;  %v842_v31 = vpack.c.bf16 %v434_v30, %v433_v29  ;;  %v435_v32 = vld [vmem:[#allocation5 + $0x30] sm:$0xff]  ;;  %v436_v33 = vld [vmem:[#allocation5 + $0x38] sm:$0xff]  ;;  %v437_v35 = vld [vmem:[#allocation5 + $0x40] sm:$0xff] }
  0x3a   :  { %v845_v34 = vpack.c.bf16 %v436_v33, %v435_v32  ;;  %v438_v36 = vld [vmem:[#allocation5 + $0x48] sm:$0xff]  ;;  %v544_v38 = vld [vmem:[%s1099_s4 + $0x1] ss:$0 sm:$0xff]  ;;  %v443_v49 = vld [vmem:[#allocation5 + $0x70] sm:$0xff] }
  0x3b   :  { %v848_v37 = vpack.c.bf16 %v438_v36, %v437_v35  ;;  %v546_v52 = vld [vmem:[%s1099_s4 + $0x2] ss:$0 sm:$0xff]  ;;  %v547_v57 = vld [vmem:[%s1101_s6] ss:$0 sm:$0xff] }
  0x3c   :  { %777 = vmatpush3.bf16.msra.mxu1 %v776_v18  ;;  %798 = vmatpush3.bf16.msra.mxu0 %v797_v39  ;;  %v346_v18 = vld [vmem:[#allocation2 + $0x160] sm:$0xff] }
  0x3d   :  { %778 = vmatprep.subr.bf16.mxu1 %v953_v1  ;;  %799 = vmatprep.subr.bf16.mxu0 %v953_v1  ;;  %v830_v20 = vpack.c.bf16 %v347_v19, %v346_v18 }
  0x40   :  { %780 = vmatpush3.bf16.msra.mxu1 %v779_v21  ;;  %801 = vmatpush3.bf16.msra.mxu0 %v800_v42  ;;  %v348_v21 = vld [vmem:[#allocation2 + $0x170] sm:$0xff] }
  0x41   :  { %781 = vmatprep.subr.bf16.mxu1 %v953_v1  ;;  %802 = vmatprep.subr.bf16.mxu0 %v953_v1  ;;  %v833_v23 = vpack.c.bf16 %v349_v22, %v348_v21 }
  0x44   :  { %783 = vmatpush3.bf16.msra.mxu1 %v782_v24  ;;  %804 = vmatpush3.bf16.msra.mxu0 %v803_v50  ;;  %v429_v24 = vld [vmem:[#allocation5] sm:$0xff]  ;;  %v444_v50 = vld [vmem:[#allocation5 + $0x78] sm:$0xff] }
  0x45   :  { %784 = vmatprep.subr.bf16.mxu1 %v953_v1  ;;  %805 = vmatprep.subr.bf16.mxu0 %v953_v1  ;;  %v857_v51 = vpack.c.bf16 %v444_v50, %v443_v49 }
  0x48   :  { %786 = vmatpush3.bf16.msra.mxu1 %v785_v27  ;;  %807 = vmatpush3.bf16.msra.mxu0 %v806_v53  ;;  %v432_v27 = vld [vmem:[#allocation5 + $0x18] sm:$0xff] }
  0x49   :  { %811 = vmatprep.subr.bf16.mxu1 %v953_v1  ;;  %808 = vmatprep.subr.bf16.mxu0 %v953_v1  ;;  %v839_v28 = vpack.c.bf16 %v432_v27, %v431_v26 }
  0x4c   :  { %810 = vmatpush3.bf16.msra.mxu0 %v809_v56 }
  0x4d   :  { %835 = vmatprep.subr.bf16.mxu0 %v953_v1 }
  0xfd   :  { %v138_v44 = vpop.f32.mrb[0].mxu0 }
  0xfe   :  { %v139_v45 = vadd.f32 %v539_v43, %v138_v44  ;;  %v622_v46 = vpop.f32.mrb[1].mxu0  ;;  %v439_v43 = vld [vmem:[#allocation5 + $0x50] sm:$0xff]  ;;  %v440_v44 = vld [vmem:[#allocation5 + $0x58] sm:$0xff] }
  0xff   :  { %v441_v46 = vld [vmem:[#allocation5 + $0x60] sm:$0xff] }
 0x100   :  { %867 = vtanh.f32 %v139_v45  ;;  %v851_v45 = vpack.c.bf16 %v440_v44, %v439_v43 }
 0x10a   :  { %v868_v47 = vpop.eup %867 }
 0x10b   :  { %656 = vmatmul.mubr.f32.vlgmr.msra.gmra.mrb[0].mxu1 %v868_v47  ;;  %v442_v47 = vld [vmem:[#allocation5 + $0x68] sm:$0xff] }
 0x10c   :  { %725 = vmatprep.mubr.msk.f32.mxu1 %vm952_vm0, %v951_v0  ;;  %813 = vmatpush3.bf16.msra.mxu1 %v812_v60  ;;  %v854_v48 = vpack.c.bf16 %v442_v47, %v441_v46 }
 0x10d   :  { %814 = vmatprep.subr.bf16.mxu1 %v953_v1 }
 0x110   :  { %816 = vmatpush3.bf16.msra.mxu1 %v815_v62 }
 0x111   :  { %817 = vmatprep.subr.bf16.mxu1 %v953_v1 }
 0x114   :  { %819 = vmatpush3.bf16.msra.mxu1 %v818_v3 }
 0x115   :  { %820 = vmatprep.subr.bf16.mxu1 %v953_v1 }
 0x118   :  { %822 = vmatpush3.bf16.msra.mxu1 %v821_v6 }
 0x119   :  { %823 = vmatprep.subr.bf16.mxu1 %v953_v1 }
 0x11c   :  { %825 = vmatpush3.bf16.msra.mxu1 %v824_v9 }
 0x11d   :  { %826 = vmatprep.subr.bf16.mxu1 %v953_v1 }
 0x120   :  { %828 = vmatpush3.bf16.msra.mxu1 %v827_v17 }
 0x121   :  { %829 = vmatprep.subr.bf16.mxu1 %v953_v1 }
 0x124   :  { %831 = vmatpush3.bf16.msra.mxu1 %v830_v20 }
 0x125   :  { %832 = vmatprep.subr.bf16.mxu1 %v953_v1 }
 0x128   :  { %834 = vmatpush3.bf16.msra.mxu1 %v833_v23 }
 0x1de   :  { %v232_v11 = vpop.f32.mrb[0].mxu1 }
 0x1df   :  { %v233_v12 = vadd.f32 %v542_v10, %v232_v11  ;;  %v657_v13 = vpop.f32.mrb[1].mxu1 }
 0x1e1   :  { %869 = vtanh.f32 %v233_v12 }
 0x1eb   :  { %v870_v14 = vpop.eup %869 }
 0x1ec   :  { %691 = vmatmul.mubr.f32.vlgmr.msra.gmra.mrb[2].mxu0 %v870_v14 }
 0x1ed   :  { %760 = vmatprep.mubr.msk.f32.mxu0 %vm952_vm0, %v951_v0  ;;  %v836_v0 = vpack.c.bf16 %v430_v25, %v429_v24 }
 0x1ef   :  { %837 = vmatpush3.bf16.msra.mxu0 %v836_v0 }
 0x1f0   :  { %838 = vmatprep.subr.bf16.mxu0 %v953_v1 }
 0x1f3   :  { %840 = vmatpush3.bf16.msra.mxu0 %v839_v28 }
 0x1f4   :  { %841 = vmatprep.subr.bf16.mxu0 %v953_v1 }
 0x1f7   :  { %843 = vmatpush3.bf16.msra.mxu0 %v842_v31 }
 0x1f8   :  { %844 = vmatprep.subr.bf16.mxu0 %v953_v1 }
 0x1fb   :  { %846 = vmatpush3.bf16.msra.mxu0 %v845_v34 }
 0x1fc   :  { %847 = vmatprep.subr.bf16.mxu0 %v953_v1 }
 0x1ff   :  { %849 = vmatpush3.bf16.msra.mxu0 %v848_v37 }
 0x200   :  { %850 = vmatprep.subr.bf16.mxu0 %v953_v1 }
 0x203   :  { %852 = vmatpush3.bf16.msra.mxu0 %v851_v45 }
 0x204   :  { %853 = vmatprep.subr.bf16.mxu0 %v953_v1 }
 0x207   :  { %855 = vmatpush3.bf16.msra.mxu0 %v854_v48 }
 0x208   :  { %856 = vmatprep.subr.bf16.mxu0 %v953_v1 }
 0x20b   :  { %858 = vmatpush3.bf16.msra.mxu0 %v857_v51 }
 0x2bf   :  { %v328_v39 = vpop.f32.mrb[2].mxu0 }
 0x2c0   :  { %v329_v40 = vadd.f32 %v544_v38, %v328_v39  ;;  %v692_v41 = vpop.f32.mrb[3].mxu0 }
 0x2c2   :  { %871 = vtanh.f32 %v329_v40 }
 0x2cc   :  { %v872_v42 = vpop.eup %871 }
 0x2cd   :  { %726 = vmatmul.mubr.f32.vlgmr.msra.gmra.mrb[2].mxu1 %v872_v42 }
 0x3a0   :  { %v424_v53 = vpop.f32.mrb[2].mxu1 }
 0x3a1   :  { %v425_v54 = vadd.f32 %v546_v52, %v424_v53  ;;  %v727_v55 = vpop.f32.mrb[3].mxu1 }
 0x3a3   :  { %873 = vtanh.f32 %v425_v54 }
 0x3ad   :  { %v874_v56 = vpop.eup %873 }
 0x3ae   :  { %761 = vmatmul.mubr.f32.vlgmr.msra.gmra.mrb[4].mxu0 %v874_v56 }
 0x481   :  { %v518_v58 = vpop.f32.mrb[4].mxu0 }
 0x482   :  { %v519_v59 = vadd.f32 %v547_v57, %v518_v58  ;;  %v762_v1 = vpop.f32.mrb[5].mxu0 }
 0x484   :  { %522 = vst [vmem:[#allocation7] sm:$0xff] %v519_v59 }
 0x485   :  { %930 = shalt.err (!%p927_p6)
}
 0x486   :  { %s931_s17 = scalar_lea.hbm %s1102_s7, 128 }
 0x487   :  { %p932_p7 = scmp.ne.s32.totalorder %s1102_s7, %s931_s17  ;;  %p935_p8 = scmp.lt.u32.totalorder %s931_s17, %s1102_s7 }
 0x489   :  { %p937_p9 = pnand %p935_p8, %p932_p7 }
 0x48b   :  { %940 = shalt.err (!%p937_p9)
}
 0x48c   :  { %532 = dma.vmem_to_hbm [thread:$0]  %s530_s14, 128, %s1102_s7, [#allocation4]  }
 0x48d   :  { %945 = dma.done.wait [#allocation4], 128  }
 0x48e   :  { %946 = vsyncadd [#allocation4], 4294967168 }
 0x48f   :  { %536 = vsyncpa [#allocation3], 1 }
 0x490   :  { %537 = vsyncpa [#allocation6], 1 }
 0x491   :  { %538 = vsyncpa [#allocation4], 1 }

// kernel: tpu_custom_call.1
= control target key start
LH: loop header
LB: loop body
LE: loop exit
PB: predicated region body
PF: predicated region fallthrough
CT: control target
= control target key end

     0   :  { %12 = vsyncpa [#allocation3], 0  ;;  %s1095_s0 = inlined_call_operand.vmem [shape: f32[8,4], index: 0, kind: input, shape index: {}]   ;;  %s1096_s1 = inlined_call_operand.vmem [shape: f32[4,128], index: 1, kind: input, shape index: {}]   ;;  %s1097_s2 = inlined_call_operand.vmem [shape: f32[1,128], index: 2, kind: input, shape index: {}]   ;;  %s1098_s3 = inlined_call_operand.hbm [shape: f32[3,128,128], index: 3, kind: input, shape index: {}]   ;;  %s1099_s4 = inlined_call_operand.vmem [shape: f32[3,1,128], index: 4, kind: input, shape index: {}]   ;;  %s1100_s5 = inlined_call_operand.hbm [shape: f32[128,128], index: 5, kind: input, shape index: {}]   ;;  %s1101_s6 = inlined_call_operand.vmem [shape: f32[1,128], index: 6, kind: input, shape index: {}]   ;;  %s1102_s7 = inlined_call_operand.hbm [shape: f32[8,128], index: 7, kind: output, shape index: {}]  }
   0x1   :  { %13 = vsyncpa [#allocation6], 0 }
   0x2   :  { %14 = vsyncpa [#allocation4], 0  ;;  %s947_s24 = smov [#allocation2]   ;;  %s875_s28 = scalar_lea.hbm %s1098_s3, 6144 }
   0x3   :  { %s26_s25 = sshll.u32 %s947_s24, 4  ;;  %p876_p0 = scmp.ne.s32.totalorder %s1098_s3, %s875_s28  ;;  %s27_s25 = int_to_ptr.vmem [resolvable:$true] %s26_s25 }
   0x4   :  { %p879_p1 = scmp.lt.u32.totalorder %s875_s28, %s1098_s3 }
   0x6   :  { %p881_p2 = pnand %p879_p1, %p876_p0 }
   0x8   :  { %884 = shalt.err (!%p881_p2)
}
   0x9   :  { %s885_s10 = scalar_lea.vmem %s27_s25, 6144  ;;  %p890_p4 = scmp.lt.s32.totalorder %s27_s25, %s27_s25 }
   0xa   :  { %p886_p3 = scmp.ne.s32.totalorder %s27_s25, %s885_s10  ;;  %p891_p5 = scmp.lt.s32.totalorder %s885_s10, %s885_s10 }
   0xc   :  { %p892_p6 = por %p891_p5, %p890_p4 }
   0xe   :  { %p893_p7 = pnand %p892_p6, %p886_p3 }
  0x10   :  { %896 = shalt.err (!%p893_p7)
}
  0x11   :  { %s948_s11 = smov 128   ;;  %s949_s12 = smov 8  }
  0x12   :  { %32 = dma.hbm_to_vmem [thread:$0]  %s1098_s3, 6144, %s27_s25, [#allocation3], %s948_s11, %s948_s11, %s949_s12  }
  0x13   :  { %s950_s15 = smov [#allocation5]   ;;  %s897_s19 = scalar_lea.hbm %s1100_s5, 2048 }
  0x14   :  { %s40_s16 = sshll.u32 %s950_s15, 4  ;;  %p898_p8 = scmp.ne.s32.totalorder %s1100_s5, %s897_s19  ;;  %s41_s16 = int_to_ptr.vmem [resolvable:$true] %s40_s16 }
  0x15   :  { %p901_p9 = scmp.lt.u32.totalorder %s897_s19, %s1100_s5 }
  0x17   :  { %p903_p10 = pnand %p901_p9, %p898_p8 }
  0x19   :  { %906 = shalt.err (!%p903_p10)
}
  0x1a   :  { %s907_s24 = scalar_lea.vmem %s41_s16, 2048  ;;  %p912_p12 = scmp.lt.s32.totalorder %s41_s16, %s41_s16 }
  0x1b   :  { %p908_p11 = scmp.ne.s32.totalorder %s41_s16, %s907_s24  ;;  %p913_p13 = scmp.lt.s32.totalorder %s907_s24, %s907_s24 }
  0x1d   :  { %p914_p0 = por %p913_p13, %p912_p12 }
  0x1f   :  { %p915_p1 = pnand %p914_p0, %p908_p11 }
  0x21   :  { %918 = shalt.err (!%p915_p1)
}
  0x22   :  { %46 = dma.hbm_to_vmem [thread:$0]  %s1100_s5, 2048, %s41_s16, [#allocation6], %s948_s11, %s948_s11, %s949_s12  }
  0x23   :  { %941 = dma.done.wait [#allocation3], 6144  }
  0x24   :  { %942 = vsyncadd [#allocation3], 4294961152 }
  0x25   :  { %943 = dma.done.wait [#allocation6], 2048  }
  0x26   :  { %944 = vsyncadd [#allocation6], 4294965248  ;;  %v951_v0 = vmov 0.0   ;;  %vm952_vm0 = vmmov 0   ;;  %v953_v1 = vmov 0.0|0.0   ;;  %vm68_vm1 = vcmask 1043456  }
  0x27   :  { %618 = vmatprep.subr.mxu0 %v951_v0  ;;  %620 = vmatprep.mubr.msk.f32.mxu0 %vm952_vm0, %v951_v0  ;;  %vm64_vm2 = vcmask 31744   ;;  %v56_v2 = vld [vmem:[%s1096_s1] sm:$0xf]  ;;  %v144_v5 = vld [vmem:[#allocation2 + $0x8] sm:$0xff]  ;;  %v145_v6 = vld [vmem:[#allocation2 + $0x10] sm:$0xff]  ;;  %s954_s13 = smov [#allocation7]  }
  0x28   :  { %763 = vmatprep.subr.bf16.mxu1 %v953_v1  ;;  %655 = vmatprep.mubr.msk.f32.mxu1 %vm952_vm0, %v951_v0  ;;  %v55_v3 = vld [vmem:[%s1095_s0] sm:$0xff]  ;;  %v146_v7 = vld [vmem:[#allocation2 + $0x18] sm:$0xff]  ;;  %v148_v11 = vld [vmem:[#allocation2 + $0x28] sm:$0xff]  ;;  %s529_s14 = sshll.u32 %s954_s13, 4  ;;  %s530_s14 = int_to_ptr.vmem [resolvable:$true] %s529_s14 }
  0x29   :  { %v143_v4 = vld [vmem:[#allocation2] sm:$0xff]  ;;  %619 = vmatpush3.msk.msra.mxu0 %vm68_vm1, %v56_v2  ;;  %v767_v9 = vpack.c.bf16 %v146_v7, %v145_v6  ;;  %v149_v13 = vld [vmem:[#allocation2 + $0x30] sm:$0xff]  ;;  %v150_v14 = vld [vmem:[#allocation2 + $0x38] sm:$0xff]  ;;  %s919_s15 = scalar_lea.vmem %s530_s14, 128  ;;  %p924_p3 = scmp.lt.s32.totalorder %s530_s14, %s530_s14 }
  0x2a   :  { %621 = vmatmul.mubr.msk.f32.vlgmr.msra.gmra.mrb[0].mxu0 %vm64_vm2, %v55_v3  ;;  %v764_v8 = vpack.c.bf16 %v144_v5, %v143_v4  ;;  %787 = vmatprep.subr.bf16.mxu0 %v953_v1  ;;  %v147_v10 = vld [vmem:[#allocation2 + $0x20] sm:$0xff]  ;;  %v773_v15 = vpack.c.bf16 %v150_v14, %v149_v13  ;;  %v152_v17 = vld [vmem:[#allocation2 + $0x48] sm:$0xff]  ;;  %v153_v19 = vld [vmem:[#allocation2 + $0x50] sm:$0xff]  ;;  %p920_p2 = scmp.ne.s32.totalorder %s530_s14, %s919_s15  ;;  %p925_p4 = scmp.lt.s32.totalorder %s919_s15, %s919_s15 }
  0x2b   :  { %690 = vmatprep.mubr.msk.f32.mxu0 %vm952_vm0, %v951_v0  ;;  %v770_v12 = vpack.c.bf16 %v148_v11, %v147_v10  ;;  %v151_v16 = vld [vmem:[#allocation2 + $0x40] sm:$0xff]  ;;  %v154_v20 = vld [vmem:[#allocation2 + $0x58] sm:$0xff]  ;;  %v156_v23 = vld [vmem:[#allocation2 + $0x68] sm:$0xff] }
  0x2c   :  { %765 = vmatpush3.bf16.msra.mxu1 %v764_v8  ;;  %v776_v18 = vpack.c.bf16 %v152_v17, %v151_v16  ;;  %v779_v21 = vpack.c.bf16 %v154_v20, %v153_v19  ;;  %v155_v22 = vld [vmem:[#allocation2 + $0x60] sm:$0xff]  ;;  %v157_v25 = vld [vmem:[#allocation2 + $0x70] sm:$0xff]  ;;  %v158_v26 = vld [vmem:[#allocation2 + $0x78] sm:$0xff]  ;;  %p926_p5 = por %p925_p4, %p924_p3 }
  0x2d   :  { %766 = vmatprep.subr.bf16.mxu1 %v953_v1  ;;  %v782_v24 = vpack.c.bf16 %v156_v23, %v155_v22  ;;  %v785_v27 = vpack.c.bf16 %v158_v26, %v157_v25  ;;  %v238_v28 = vld [vmem:[#allocation2 + $0x80] sm:$0xff]  ;;  %v239_v29 = vld [vmem:[#allocation2 + $0x88] sm:$0xff]  ;;  %v240_v30 = vld [vmem:[#allocation2 + $0x90] sm:$0xff] }
  0x2e   :  { %v788_v31 = vpack.c.bf16 %v239_v29, %v238_v28  ;;  %v241_v32 = vld [vmem:[#allocation2 + $0x98] sm:$0xff]  ;;  %v242_v34 = vld [vmem:[#allocation2 + $0xa0] sm:$0xff]  ;;  %v243_v35 = vld [vmem:[#allocation2 + $0xa8] sm:$0xff]  ;;  %p927_p6 = pnand %p926_p5, %p920_p2 }
  0x2f   :  { %v791_v33 = vpack.c.bf16 %v241_v32, %v240_v30  ;;  %v794_v36 = vpack.c.bf16 %v243_v35, %v242_v34  ;;  %v244_v37 = vld [vmem:[#allocation2 + $0xb0] sm:$0xff]  ;;  %v245_v38 = vld [vmem:[#allocation2 + $0xb8] sm:$0xff]  ;;  %v246_v40 = vld [vmem:[#allocation2 + $0xc0] sm:$0xff] }
  0x30   :  { %768 = vmatpush3.bf16.msra.mxu1 %v767_v9  ;;  %789 = vmatpush3.bf16.msra.mxu0 %v788_v31  ;;  %v797_v39 = vpack.c.bf16 %v245_v38, %v244_v37  ;;  %v247_v41 = vld [vmem:[#allocation2 + $0xc8] sm:$0xff]  ;;  %v539_v43 = vld [vmem:[%s1097_s2] ss:$0 sm:$0xff]  ;;  %v248_v48 = vld [vmem:[#allocation2 + $0xd0] sm:$0xff] }
  0x31   :  { %769 = vmatprep.subr.bf16.mxu1 %v953_v1  ;;  %790 = vmatprep.subr.bf16.mxu0 %v953_v1  ;;  %v800_v42 = vpack.c.bf16 %v247_v41, %v246_v40  ;;  %v249_v49 = vld [vmem:[#allocation2 + $0xd8] sm:$0xff]  ;;  %v250_v51 = vld [vmem:[#allocation2 + $0xe0] sm:$0xff]  ;;  %v251_v52 = vld [vmem:[#allocation2 + $0xe8] sm:$0xff] }
  0x32   :  { %v803_v50 = vpack.c.bf16 %v249_v49, %v248_v48  ;;  %v806_v53 = vpack.c.bf16 %v251_v52, %v250_v51  ;;  %v252_v54 = vld [vmem:[#allocation2 + $0xf0] sm:$0xff]  ;;  %v253_v55 = vld [vmem:[#allocation2 + $0xf8] sm:$0xff]  ;;  %v334_v57 = vld [vmem:[#allocation2 + $0x100] sm:$0xff] }
  0x33   :  { %v809_v56 = vpack.c.bf16 %v253_v55, %v252_v54  ;;  %v335_v58 = vld [vmem:[#allocation2 + $0x108] sm:$0xff]  ;;  %v336_v59 = vld [vmem:[#allocation2 + $0x110] sm:$0xff]  ;;  %v337_v61 = vld [vmem:[#allocation2 + $0x118] sm:$0xff] }
  0x34   :  { %771 = vmatpush3.bf16.msra.mxu1 %v770_v12  ;;  %792 = vmatpush3.bf16.msra.mxu0 %v791_v33  ;;  %v812_v60 = vpack.c.bf16 %v335_v58, %v334_v57  ;;  %v815_v62 = vpack.c.bf16 %v337_v61, %v336_v59  ;;  %v338_v63 = vld [vmem:[#allocation2 + $0x120] sm:$0xff]  ;;  %v339_v2 = vld [vmem:[#allocation2 + $0x128] sm:$0xff]  ;;  %v340_v4 = vld [vmem:[#allocation2 + $0x130] sm:$0xff] }
  0x35   :  { %772 = vmatprep.subr.bf16.mxu1 %v953_v1  ;;  %793 = vmatprep.subr.bf16.mxu0 %v953_v1  ;;  %v818_v3 = vpack.c.bf16 %v339_v2, %v338_v63  ;;  %v341_v5 = vld [vmem:[#allocation2 + $0x138] sm:$0xff]  ;;  %v342_v7 = vld [vmem:[#allocation2 + $0x140] sm:$0xff]  ;;  %v343_v8 = vld [vmem:[#allocation2 + $0x148] sm:$0xff] }
  0x36   :  { %v821_v6 = vpack.c.bf16 %v341_v5, %v340_v4  ;;  %v824_v9 = vpack.c.bf16 %v343_v8, %v342_v7  ;;  %v542_v10 = vld [vmem:[%s1099_s4] ss:$0 sm:$0xff]  ;;  %v345_v16 = vld [vmem:[#allocation2 + $0x158] sm:$0xff]  ;;  %v347_v19 = vld [vmem:[#allocation2 + $0x168] sm:$0xff] }
  0x37   :  { %v349_v22 = vld [vmem:[#allocation2 + $0x178] sm:$0xff]  ;;  %v430_v25 = vld [vmem:[#allocation5 + $0x8] sm:$0xff]  ;;  %v431_v26 = vld [vmem:[#allocation5 + $0x10] sm:$0xff] }
  0x38   :  { %774 = vmatpush3.bf16.msra.mxu1 %v773_v15  ;;  %795 = vmatpush3.bf16.msra.mxu0 %v794_v36  ;;  %v344_v15 = vld [vmem:[#allocation2 + $0x150] sm:$0xff]  ;;  %v433_v29 = vld [vmem:[#allocation5 + $0x20] sm:$0xff]  ;;  %v434_v30 = vld [vmem:[#allocation5 + $0x28] sm:$0xff] }
  0x39   :  { %775 = vmatprep.subr.bf16.mxu1 %v953_v1  ;;  %796 = vmatprep.subr.bf16.mxu0 %v953_v1  ;;  %v827_v17 = vpack.c.bf16 %v345_v16, %v344_v15  ;;  %v842_v31 = vpack.c.bf16 %v434_v30, %v433_v29  ;;  %v435_v32 = vld [vmem:[#allocation5 + $0x30] sm:$0xff]  ;;  %v436_v33 = vld [vmem:[#allocation5 + $0x38] sm:$0xff]  ;;  %v437_v35 = vld [vmem:[#allocation5 + $0x40] sm:$0xff] }
  0x3a   :  { %v845_v34 = vpack.c.bf16 %v436_v33, %v435_v32  ;;  %v438_v36 = vld [vmem:[#allocation5 + $0x48] sm:$0xff]  ;;  %v544_v38 = vld [vmem:[%s1099_s4 + $0x1] ss:$0 sm:$0xff]  ;;  %v443_v49 = vld [vmem:[#allocation5 + $0x70] sm:$0xff] }
  0x3b   :  { %v848_v37 = vpack.c.bf16 %v438_v36, %v437_v35  ;;  %v546_v52 = vld [vmem:[%s1099_s4 + $0x2] ss:$0 sm:$0xff]  ;;  %v547_v57 = vld [vmem:[%s1101_s6] ss:$0 sm:$0xff] }
  0x3c   :  { %777 = vmatpush3.bf16.msra.mxu1 %v776_v18  ;;  %798 = vmatpush3.bf16.msra.mxu0 %v797_v39  ;;  %v346_v18 = vld [vmem:[#allocation2 + $0x160] sm:$0xff] }
  0x3d   :  { %778 = vmatprep.subr.bf16.mxu1 %v953_v1  ;;  %799 = vmatprep.subr.bf16.mxu0 %v953_v1  ;;  %v830_v20 = vpack.c.bf16 %v347_v19, %v346_v18 }
  0x40   :  { %780 = vmatpush3.bf16.msra.mxu1 %v779_v21  ;;  %801 = vmatpush3.bf16.msra.mxu0 %v800_v42  ;;  %v348_v21 = vld [vmem:[#allocation2 + $0x170] sm:$0xff] }
  0x41   :  { %781 = vmatprep.subr.bf16.mxu1 %v953_v1  ;;  %802 = vmatprep.subr.bf16.mxu0 %v953_v1  ;;  %v833_v23 = vpack.c.bf16 %v349_v22, %v348_v21 }
  0x44   :  { %783 = vmatpush3.bf16.msra.mxu1 %v782_v24  ;;  %804 = vmatpush3.bf16.msra.mxu0 %v803_v50  ;;  %v429_v24 = vld [vmem:[#allocation5] sm:$0xff]  ;;  %v444_v50 = vld [vmem:[#allocation5 + $0x78] sm:$0xff] }
  0x45   :  { %784 = vmatprep.subr.bf16.mxu1 %v953_v1  ;;  %805 = vmatprep.subr.bf16.mxu0 %v953_v1  ;;  %v857_v51 = vpack.c.bf16 %v444_v50, %v443_v49 }
  0x48   :  { %786 = vmatpush3.bf16.msra.mxu1 %v785_v27  ;;  %807 = vmatpush3.bf16.msra.mxu0 %v806_v53  ;;  %v432_v27 = vld [vmem:[#allocation5 + $0x18] sm:$0xff] }
  0x49   :  { %811 = vmatprep.subr.bf16.mxu1 %v953_v1  ;;  %808 = vmatprep.subr.bf16.mxu0 %v953_v1  ;;  %v839_v28 = vpack.c.bf16 %v432_v27, %v431_v26 }
  0x4c   :  { %810 = vmatpush3.bf16.msra.mxu0 %v809_v56 }
  0x4d   :  { %835 = vmatprep.subr.bf16.mxu0 %v953_v1 }
  0xfd   :  { %v138_v44 = vpop.f32.mrb[0].mxu0 }
  0xfe   :  { %v139_v45 = vadd.f32 %v539_v43, %v138_v44  ;;  %v622_v46 = vpop.f32.mrb[1].mxu0  ;;  %v439_v43 = vld [vmem:[#allocation5 + $0x50] sm:$0xff]  ;;  %v440_v44 = vld [vmem:[#allocation5 + $0x58] sm:$0xff] }
  0xff   :  { %v441_v46 = vld [vmem:[#allocation5 + $0x60] sm:$0xff] }
 0x100   :  { %867 = vtanh.f32 %v139_v45  ;;  %v851_v45 = vpack.c.bf16 %v440_v44, %v439_v43 }
 0x10a   :  { %v868_v47 = vpop.eup %867 }
 0x10b   :  { %656 = vmatmul.mubr.f32.vlgmr.msra.gmra.mrb[0].mxu1 %v868_v47  ;;  %v442_v47 = vld [vmem:[#allocation5 + $0x68] sm:$0xff] }
 0x10c   :  { %725 = vmatprep.mubr.msk.f32.mxu1 %vm952_vm0, %v951_v0  ;;  %813 = vmatpush3.bf16.msra.mxu1 %v812_v60  ;;  %v854_v48 = vpack.c.bf16 %v442_v47, %v441_v46 }
 0x10d   :  { %814 = vmatprep.subr.bf16.mxu1 %v953_v1 }
 0x110   :  { %816 = vmatpush3.bf16.msra.mxu1 %v815_v62 }
 0x111   :  { %817 = vmatprep.subr.bf16.mxu1 %v953_v1 }
 0x114   :  { %819 = vmatpush3.bf16.msra.mxu1 %v818_v3 }
 0x115   :  { %820 = vmatprep.subr.bf16.mxu1 %v953_v1 }
 0x118   :  { %822 = vmatpush3.bf16.msra.mxu1 %v821_v6 }
 0x119   :  { %823 = vmatprep.subr.bf16.mxu1 %v953_v1 }
 0x11c   :  { %825 = vmatpush3.bf16.msra.mxu1 %v824_v9 }
 0x11d   :  { %826 = vmatprep.subr.bf16.mxu1 %v953_v1 }
 0x120   :  { %828 = vmatpush3.bf16.msra.mxu1 %v827_v17 }
 0x121   :  { %829 = vmatprep.subr.bf16.mxu1 %v953_v1 }
 0x124   :  { %831 = vmatpush3.bf16.msra.mxu1 %v830_v20 }
 0x125   :  { %832 = vmatprep.subr.bf16.mxu1 %v953_v1 }
 0x128   :  { %834 = vmatpush3.bf16.msra.mxu1 %v833_v23 }
 0x1de   :  { %v232_v11 = vpop.f32.mrb[0].mxu1 }
 0x1df   :  { %v233_v12 = vadd.f32 %v542_v10, %v232_v11  ;;  %v657_v13 = vpop.f32.mrb[1].mxu1 }
 0x1e1   :  { %869 = vtanh.f32 %v233_v12 }
 0x1eb   :  { %v870_v14 = vpop.eup %869 }
 0x1ec   :  { %691 = vmatmul.mubr.f32.vlgmr.msra.gmra.mrb[2].mxu0 %v870_v14 }
 0x1ed   :  { %760 = vmatprep.mubr.msk.f32.mxu0 %vm952_vm0, %v951_v0  ;;  %v836_v0 = vpack.c.bf16 %v430_v25, %v429_v24 }
 0x1ef   :  { %837 = vmatpush3.bf16.msra.mxu0 %v836_v0 }
 0x1f0   :  { %838 = vmatprep.subr.bf16.mxu0 %v953_v1 }
 0x1f3   :  { %840 = vmatpush3.bf16.msra.mxu0 %v839_v28 }
 0x1f4   :  { %841 = vmatprep.subr.bf16.mxu0 %v953_v1 }
 0x1f7   :  { %843 = vmatpush3.bf16.msra.mxu0 %v842_v31 }
 0x1f8   :  { %844 = vmatprep.subr.bf16.mxu0 %v953_v1 }
 0x1fb   :  { %846 = vmatpush3.bf16.msra.mxu0 %v845_v34 }
 0x1fc   :  { %847 = vmatprep.subr.bf16.mxu0 %v953_v1 }
 0x1ff   :  { %849 = vmatpush3.bf16.msra.mxu0 %v848_v37 }
 0x200   :  { %850 = vmatprep.subr.bf16.mxu0 %v953_v1 }
 0x203   :  { %852 = vmatpush3.bf16.msra.mxu0 %v851_v45 }
 0x204   :  { %853 = vmatprep.subr.bf16.mxu0 %v953_v1 }
 0x207   :  { %855 = vmatpush3.bf16.msra.mxu0 %v854_v48 }
 0x208   :  { %856 = vmatprep.subr.bf16.mxu0 %v953_v1 }
 0x20b   :  { %858 = vmatpush3.bf16.msra.mxu0 %v857_v51 }
 0x2bf   :  { %v328_v39 = vpop.f32.mrb[2].mxu0 }
 0x2c0   :  { %v329_v40 = vadd.f32 %v544_v38, %v328_v39  ;;  %v692_v41 = vpop.f32.mrb[3].mxu0 }
 0x2c2   :  { %871 = vtanh.f32 %v329_v40 }
 0x2cc   :  { %v872_v42 = vpop.eup %871 }
 0x2cd   :  { %726 = vmatmul.mubr.f32.vlgmr.msra.gmra.mrb[2].mxu1 %v872_v42 }
 0x3a0   :  { %v424_v53 = vpop.f32.mrb[2].mxu1 }
 0x3a1   :  { %v425_v54 = vadd.f32 %v546_v52, %v424_v53  ;;  %v727_v55 = vpop.f32.mrb[3].mxu1 }
 0x3a3   :  { %873 = vtanh.f32 %v425_v54 }
 0x3ad   :  { %v874_v56 = vpop.eup %873 }
 0x3ae   :  { %761 = vmatmul.mubr.f32.vlgmr.msra.gmra.mrb[4].mxu0 %v874_v56 }
 0x481   :  { %v518_v58 = vpop.f32.mrb[4].mxu0 }
 0x482   :  { %v519_v59 = vadd.f32 %v547_v57, %v518_v58  ;;  %v762_v1 = vpop.f32.mrb[5].mxu0 }
 0x484   :  { %522 = vst [vmem:[#allocation7] sm:$0xff] %v519_v59 }
 0x485   :  { %930 = shalt.err (!%p927_p6)
}
 0x486   :  { %s931_s17 = scalar_lea.hbm %s1102_s7, 128 }
 0x487   :  { %p932_p7 = scmp.ne.s32.totalorder %s1102_s7, %s931_s17  ;;  %p935_p8 = scmp.lt.u32.totalorder %s931_s17, %s1102_s7 }
 0x489   :  { %p937_p9 = pnand %p935_p8, %p932_p7 }
 0x48b   :  { %940 = shalt.err (!%p937_p9)
}
 0x48c   :  { %532 = dma.vmem_to_hbm [thread:$0]  %s530_s14, 128, %s1102_s7, [#allocation4]  }
 0x48d   :  { %945 = dma.done.wait [#allocation4], 128  }
 0x48e   :  { %946 = vsyncadd [#allocation4], 4294967168 }
 0x48f   :  { %536 = vsyncpa [#allocation3], 1 }
 0x490   :  { %537 = vsyncpa [#allocation6], 1 }
 0x491   :  { %538 = vsyncpa [#allocation4], 1 }

</bundles_post_ra>
